<compile_context>
chip_gen: v6e
topology: v6e:2x2x1
jax: 0.10.0
libtpu: 0.0.40
codegen_flags: <defaults>
</compile_context>

<pallas_src>
import jax
import jax.numpy as jnp
from jax.experimental import pallas as pl
from jax.experimental.pallas import tpu as pltpu

_LANE = 128
_MIN_SPLIT_BYTES = 1 * 1024 * 1024      # above this, force >=2 blocks (v7x 2 TCs)


def _sublane_multiple(dtype) -> int:
    """Native sublane packing multiple for a dtype (8 f32 / 16 bf16 / 32 int8)."""
    itemsize = jnp.dtype(dtype).itemsize
    if itemsize >= 4:
        return 8
    if itemsize == 2:
        return 16
    return 32


def _generation_config():
    """(target_tile_bytes, vmem_limit_bytes) tuned per TPU generation."""
    vmem_bytes = None
    try:
        vmem_bytes = getattr(pltpu.get_tpu_info(), "vmem_capacity_bytes", None)
    except Exception:
        pass
    if vmem_bytes is not None and vmem_bytes <= 64 * 1024 * 1024:
        # v7x: 64 MiB VMEM per TC; 4 MiB tiles -> 16 MiB of double buffers per TC.
        return 4 * 1024 * 1024, 32 * 1024 * 1024
    # v5e / v6e: 128 MiB VMEM; 8 MiB tiles -> 32 MiB of double buffers.
    # (v5e's scoped default is only 16 MiB, so the explicit raise is required.)
    return 8 * 1024 * 1024, 64 * 1024 * 1024


def _copy_kernel(src_ref, dst_ref):
    # forward(): return self.param -> straight copy through VMEM.
    dst_ref[...] = src_ref[...]


def _tiled_copy_2d(x: jax.Array, *, alias_output: bool = False) -> jax.Array:
    """(row, col)-tiled, software-pipelined HBM->VMEM->HBM copy of a 2D array.

    Precondition (ensured by the wrapper): x.shape[1] is a multiple of 128.
    """
    rows, cols = x.shape
    itemsize = jnp.dtype(x.dtype).itemsize
    sub = _sublane_multiple(x.dtype)
    target_tile_bytes, vmem_limit = _generation_config()

    row_bytes = cols * itemsize
    if sub * row_bytes <= target_tile_bytes:
        # Full-width rows; pick the biggest sublane-aligned row tile within budget.
        tn = cols
        tm = max(sub, (target_tile_bytes // max(1, row_bytes)) // sub * sub)
        if tm >= rows:
            tm = rows
    else:
        # Rows too wide for the budget even at one sublane group: tile columns too.
        tm = min(sub, rows)
        tn = max(_LANE, (target_tile_bytes // (sub * itemsize)) // _LANE * _LANE)
        tn = min(tn, cols)

    # Guarantee >=2 blocks for sizeable params so both v7x TCs issue DMAs.
    total_bytes = rows * row_bytes
    if (pl.cdiv(rows, tm) == 1 and pl.cdiv(cols, tn) == 1
            and total_bytes >= _MIN_SPLIT_BYTES and rows >= 2 * sub):
        tm = max(sub, ((rows // 2) // sub) * sub)

    grid = (pl.cdiv(rows, tm), pl.cdiv(cols, tn))

    return pl.pallas_call(
        _copy_kernel,
        out_shape=jax.ShapeDtypeStruct((rows, cols), x.dtype),
        grid=grid,
        in_specs=[pl.BlockSpec((tm, tn), lambda i, j: (i, j))],
        out_specs=pl.BlockSpec((tm, tn), lambda i, j: (i, j)),
        input_output_aliases={0: 0} if alias_output else {},
        compiler_params=pltpu.CompilerParams(
            # Both axes independent -> shardable across v7x's 2 TCs; harmless on v5e/v6e.
            dimension_semantics=("parallel", "parallel"),
            vmem_limit_bytes=vmem_limit,
        ),
        cost_estimate=pl.CostEstimate(
            flops=0, transcendentals=0,
            bytes_accessed=2 * rows * cols * itemsize),
    )(x)


def unconstrained_tensor_forward(param: jax.Array, *, force_kernel: bool = False,
                                 alias_output: bool = False) -> jax.Array:
    """Pallas implementation of UnconstrainedTensor.forward().

    alias_output=True donates the input buffer to the output (no independent
    copy) — matches PyTorch's aliasing of self.param; only used with force_kernel.
    """
    if param.ndim != 2:
        raise ValueError("UnconstrainedTensor.param must be 2D (dim1, dim2)")
    dim1, dim2 = param.shape

    # Hot path: forward() is the identity. Never launch a copy kernel — it is
    # pure dispatch overhead plus 2x the param's HBM traffic, at any size.
    if not force_kernel:
        return param

    if dim2 % _LANE == 0:
        # Already lane-dense.
        return _tiled_copy_2d(param, alias_output=alias_output)

    if (dim1 * dim2) % _LANE == 0:
        # Lane-dense (rows, 128) view so stores are full-width vst; reshape back.
        flat = param.reshape((dim1 * dim2) // _LANE, _LANE)
        return _tiled_copy_2d(flat, alias_output=alias_output).reshape(dim1, dim2)

    # Ragged dim2: zero-pad the last dim to the next multiple of 128 so the
    # kernel stays lane-dense (no masked vst.msk), then slice the copy back.
    pad = (-dim2) % _LANE
    padded = jnp.pad(param, ((0, 0), (0, pad)))
    return _tiled_copy_2d(padded, alias_output=alias_output)[:, :dim2]


class UnconstrainedTensor:
    """JAX/Pallas port of the PyTorch UnconstrainedTensor module."""

    def __init__(self, dim1, dim2, init_tensor=None, init_std=0.1, key=None):
        self._dim1 = dim1
        self._dim2 = dim2
        if init_tensor is None:
            if key is None:
                key = jax.random.PRNGKey(0)
            # torch.empty(dim1, dim2).normal_(mean=0.0, std=init_std)
            # TODO(synk): jax.random.normal will not bit-match torch's RNG; irrelevant to forward().
            init_tensor = init_std * jax.random.normal(
                key, (dim1, dim2), dtype=jnp.float32
            )
        self.param = jnp.asarray(init_tensor, dtype=jnp.float32)

    def __call__(self, force_kernel: bool = False, alias_output: bool = False):
        return unconstrained_tensor_forward(
            self.param, force_kernel=force_kernel, alias_output=alias_output)


if __name__ == "__main__":
    key = jax.random.PRNGKey(0)

    # Small, deterministic setup matching the module: a learnable 8x32 tensor.
    module = UnconstrainedTensor(dim1=8, dim2=32, init_std=0.1, key=key)

    # Hot path: identity pass-through, no kernel and no extra HBM traffic.
    out_fast = jax.block_until_ready(module())
    assert out_fast.shape == (8, 32) and out_fast.dtype == jnp.float32
    assert bool(jnp.array_equal(out_fast, module.param)), "fast path mismatch"

    # Explicit kernel path (lane-dense flattened copy: (8,32) -> (2,128) view).
    out_kernel = jax.block_until_ready(module(force_kernel=True))
    assert out_kernel.shape == (8, 32) and out_kernel.dtype == jnp.float32
    assert bool(jnp.array_equal(out_kernel, module.param)), "kernel path mismatch"

    # Row/col-tiled lane-dense branch (dim2 multiple of 128).
    module2 = UnconstrainedTensor(dim1=64, dim2=128, init_std=0.1,
                                  key=jax.random.PRNGKey(1))
    out2 = jax.block_until_ready(module2(force_kernel=True))
    assert out2.shape == (64, 128) and out2.dtype == jnp.float32
    assert bool(jnp.array_equal(out2, module2.param)), "tiled path mismatch"

    # Ragged dim2 branch (pad-to-128, copy, slice back): (8, 50).
    module3 = UnconstrainedTensor(dim1=8, dim2=50, init_std=0.1,
                                  key=jax.random.PRNGKey(2))
    out3 = jax.block_until_ready(module3(force_kernel=True))
    assert out3.shape == (8, 50) and out3.dtype == jnp.float32
    assert bool(jnp.array_equal(out3, module3.param)), "ragged path mismatch"

    # Aliased copy path: output donates/aliases the input buffer (pass a fresh
    # array so the original param stays valid for comparison).
    fresh = jnp.array(module2.param)
    out_alias = jax.block_until_ready(
        unconstrained_tensor_forward(fresh, force_kernel=True, alias_output=True))
    assert bool(jnp.array_equal(out_alias, module2.param)), "alias path mismatch"

    print("KERNEL_OK")
</pallas_src>

<mosaic_0001>
module attributes {stable_mosaic.version = 11 : i64} {
  func.func @_copy_kernel(%arg0: i32, %arg1: i32, %arg2: memref<2x128xf32, #tpu.memory_space<vmem>>, %arg3: memref<2x128xf32, #tpu.memory_space<vmem>>) attributes {dimension_semantics = [#tpu.dimension_semantics<parallel>, #tpu.dimension_semantics<parallel>], iteration_bounds = array<i64: 1, 1>, scalar_prefetch = 0 : i64, scratch_operands = 0 : i64, tpu.core_type = #tpu.core_type<tc>, window_params = [{transform_indices = @transform_0, window_bounds = array<i64: 2, 128>}, {transform_indices = @transform_1, window_bounds = array<i64: 2, 128>}]} {
    %c0 = arith.constant 0 : index
    %c0_0 = arith.constant 0 : index
    %0 = vector.load %arg2[%c0, %c0_0] : memref<2x128xf32, #tpu.memory_space<vmem>>, vector<2x128xf32>
    %c0_1 = arith.constant 0 : index
    %c0_2 = arith.constant 0 : index
    %1 = vector.load %arg3[%c0_1, %c0_2] : memref<2x128xf32, #tpu.memory_space<vmem>>, vector<2x128xf32>
    tpu.vector_store %arg3[%c0_1, %c0_2], %0 {strides = array<i32>} : memref<2x128xf32, #tpu.memory_space<vmem>>, vector<2x128xf32>,
    return
  }
  func.func @transform_0(%arg0: i32, %arg1: i32) -> (i32, i32) {
    %c0_i32 = arith.constant 0 : i32
    return %arg0, %arg1 : i32, i32
  }
  func.func @transform_1(%arg0: i32, %arg1: i32) -> (i32, i32) {
    %c0_i32 = arith.constant 0 : i32
    return %arg0, %arg1 : i32, i32
  }
}

</mosaic_0001>

<bundles_post_ra>
// kernel: tpu_custom_call.1
= control target key start
LH: loop header
LB: loop body
LE: loop exit
PB: predicated region body
PF: predicated region fallthrough
CT: control target
= control target key end

     0   :  { %6 = vsyncpa [#allocation3], 0  ;;  %s102_s0 = inlined_call_operand.hbm [shape: f32[2,128], index: 0, kind: input, shape index: {}]   ;;  %s103_s1 = inlined_call_operand.hbm [shape: f32[2,128], index: 1, kind: output, shape index: {}]  }
   0x1   :  { %7 = vsyncpa [#allocation4], 0  ;;  %s84_s6 = smov [#allocation2]  }
   0x2   :  { %s14_s7 = sshll.u32 %s84_s6, 4  ;;  %s15_s7 = int_to_ptr.vmem [resolvable:$true] %s14_s7 }
   0x3   :  { %s48_s8 = scalar_lea.vmem %s15_s7, 32  ;;  %p53_p1 = scmp.lt.s32.totalorder %s15_s7, %s15_s7 }
   0x4   :  { %p49_p0 = scmp.ne.s32.totalorder %s15_s7, %s48_s8  ;;  %p54_p2 = scmp.lt.s32.totalorder %s48_s8, %s48_s8 }
   0x6   :  { %p55_p3 = por %p54_p2, %p53_p1 }
   0x8   :  { %p56_p4 = pnand %p55_p3, %p49_p0 }
   0xa   :  { %59 = shalt.err (!%p56_p4)
}
   0xb   :  { %17 = dma.hbm_to_vmem [thread:$0]  %s102_s0, 32, %s15_s7, [#allocation3]  }
   0xc   :  { %80 = dma.done.wait [#allocation3], 32  }
   0xd   :  { %81 = vsyncadd [#allocation3], 4294967264  ;;  %s85_s11 = smov [#allocation5]   ;;  %v21_v0 = vld [vmem:[#allocation2] sm:$0x3] }
   0xe   :  { %s29_s12 = sshll.u32 %s85_s11, 4  ;;  %22 = vst [vmem:[#allocation5] sm:$0x3] %v21_v0  ;;  %s30_s12 = int_to_ptr.vmem [resolvable:$true] %s29_s12 }
   0xf   :  { %s60_s13 = scalar_lea.vmem %s30_s12, 32  ;;  %p65_p6 = scmp.lt.s32.totalorder %s30_s12, %s30_s12 }
  0x10   :  { %p61_p5 = scmp.ne.s32.totalorder %s30_s12, %s60_s13  ;;  %p66_p7 = scmp.lt.s32.totalorder %s60_s13, %s60_s13 }
  0x12   :  { %p67_p8 = por %p66_p7, %p65_p6 }
  0x14   :  { %p68_p9 = pnand %p67_p8, %p61_p5 }
  0x16   :  { %71 = shalt.err (!%p68_p9)
}
  0x17   :  { %32 = dma.vmem_to_hbm [thread:$0]  %s30_s12, 32, %s103_s1, [#allocation4]  }
  0x18   :  { %82 = dma.done.wait [#allocation4], 32  }
  0x19   :  { %83 = vsyncadd [#allocation4], 4294967264 }
  0x1a   :  { %36 = vsyncpa [#allocation3], 1 }
  0x1b   :  { %37 = vsyncpa [#allocation4], 1 }

</bundles_post_ra>
